<compile_context>
chip_gen: v6e
topology: v6e:2x2x1
jax: 0.10.0
libtpu: 0.0.40
codegen_flags: <defaults>
</compile_context>

<pallas_src>
import jax
import jax.numpy as jnp
from jax import lax
from jax.experimental import pallas as pl
from jax.experimental.pallas import tpu as pltpu

_LANE = 128  # vreg lane width


def _round_up(x, m):
    return ((x + m - 1) // m) * m


def _tpu_generation_defaults():
    """(tile_b, vmem_limit_bytes) defaults by TPU generation."""
    try:
        kind = jax.devices()[0].device_kind.lower()
    except Exception:  # pragma: no cover - defensive
        kind = ""
    if "v5" in kind or "v6" in kind:
        # 128 MiB physical VMEM: bigger batch tiles amortize per-step overhead.
        return 4096, 96 * 1024 * 1024
    # v7x (64 MiB VMEM per TC) and unknown generations: stay conservative.
    return 2048, 48 * 1024 * 1024


def _value_net_kernel(x_ref, w1_ref, b1_ref, w2_ref, b2_ref, w3_ref, b3_ref,
                      out_ref):
    """Fused MLP tile: relu(x@W1+b1) -> relu(.@W2+b2) -> lane-dense value row."""
    x = x_ref[...]                                                # (TILE_B, in) bf16
    # fc1 (MXU, f32 accumulate) + f32 bias/ReLU epilogue (f32 VPU: safe on v5e).
    h1 = jnp.dot(x, w1_ref[...], preferred_element_type=jnp.float32)
    h1 = jnp.maximum(h1 + b1_ref[...], 0.0)
    # fc2 (MXU) + f32 epilogue.
    h1 = h1.astype(w2_ref.dtype)
    h2 = jnp.dot(h1, w2_ref[...], preferred_element_type=jnp.float32)
    h2 = jnp.maximum(h2 + b2_ref[...], 0.0)                      # (TILE_B, fc2p) f32
    # Value head: contract the resident (1, fc2p) w3 row against h2's fc2p axis,
    # producing the (1, TILE_B) output row *directly* in lane-dense layout
    # (no sublane->lane relayout, no masked column stores).
    v_row = lax.dot_general(
        w3_ref[...], h2.astype(w3_ref.dtype),
        dimension_numbers=(((1,), (1,)), ((), ())),
        preferred_element_type=jnp.float32)                      # (1, TILE_B) f32
    v_row = v_row + b3_ref[0, 0]                                  # scalar bias from SMEM
    out_ref[...] = v_row.reshape(out_ref.shape).astype(out_ref.dtype)


def value_network_forward(state, params, *, tile_b=None, vmem_limit_bytes=None,
                          compute_dtype=jnp.bfloat16):
    """Run the fused ValueNetwork forward pass on TPU via Pallas.

    state:  (B, input_dims) float32
    params: dict with w1 (in, fc1), b1 (1, fc1), w2 (fc1, fc2), b2 (1, fc2),
            w3 (1, fc2) [value-head weight stored as a row], b3 (1, 1)
    returns (B, 1) float32
    """
    dflt_tile, dflt_vmem = _tpu_generation_defaults()
    if tile_b is None:
        tile_b = dflt_tile
    if vmem_limit_bytes is None:
        vmem_limit_bytes = dflt_vmem

    B, input_dims = state.shape
    fc1_dims = params["w1"].shape[1]
    fc2_dims = params["w2"].shape[1]
    fc1p = _round_up(fc1_dims, _LANE)
    fc2p = _round_up(fc2_dims, _LANE)

    # Zero-pad hidden widths to the 128-lane width: ReLU(0) = 0 and padded w3
    # entries are 0, so padded hidden units are exact no-ops; weights are
    # VMEM-resident so this costs no extra HBM traffic.
    w1 = jnp.pad(params["w1"].astype(compute_dtype),
                 ((0, 0), (0, fc1p - fc1_dims)))
    w2 = jnp.pad(params["w2"].astype(compute_dtype),
                 ((0, fc1p - fc1_dims), (0, fc2p - fc2_dims)))
    w3 = jnp.pad(params["w3"].astype(compute_dtype),
                 ((0, 0), (0, fc2p - fc2_dims)))
    b1 = jnp.pad(params["b1"].astype(jnp.float32), ((0, 0), (0, fc1p - fc1_dims)))
    b2 = jnp.pad(params["b2"].astype(jnp.float32), ((0, 0), (0, fc2p - fc2_dims)))
    b3 = params["b3"].astype(jnp.float32).reshape(1, 1)

    # Batch tile: multiple of 8 sublanes.  If the whole batch would fit in a
    # single tile, split it so the grid has >= 2 steps and both v7x
    # TensorCores get work (v5e/v6e are single-TC: harmless).
    tile_cap = max(8, _round_up(int(tile_b), 8))
    if B > tile_cap:
        tile = tile_cap
    elif B > 8:
        tile = _round_up(pl.cdiv(B, 2), 8)
    else:
        tile = 8
    padded_B = _round_up(B, tile)
    num_tiles = padded_B // tile

    x = state.astype(compute_dtype)
    if padded_B != B:
        # Rows are independent; padded rows compute garbage that is sliced off.
        x = jnp.pad(x, ((0, padded_B - B), (0, 0)))

    itemsize = jnp.dtype(compute_dtype).itemsize
    flops = 2 * padded_B * (input_dims * fc1p + fc1p * fc2p + fc2p)
    bytes_accessed = (
        padded_B * input_dims * itemsize                        # streamed state
        + (input_dims * fc1p + fc1p * fc2p + fc2p) * itemsize   # resident weights
        + (fc1p + fc2p + 1) * 4                                 # f32 biases
        + padded_B * 4)                                         # f32 output

    # Grid-invariant weights/biases: single-buffer them when they are big
    # enough for the reclaimed VMEM to matter (v7x only has 64 MiB per TC).
    single_buffer = (fc1p * fc2p * itemsize) >= (1 << 20)

    def _resident(shape):
        idx_map = lambda i: (0,) * len(shape)
        if single_buffer:
            try:
                return pl.BlockSpec(shape, idx_map, pipeline_mode=pl.Buffered(1))
            except Exception:
                pass
        return pl.BlockSpec(shape, idx_map)

    out = pl.pallas_call(
        _value_net_kernel,
        out_shape=jax.ShapeDtypeStruct((num_tiles, 1, tile), jnp.float32),
        grid=(num_tiles,),
        in_specs=[
            # state: tiled over batch, double-buffer pipelined by Pallas.
            pl.BlockSpec((tile, input_dims), lambda i: (i, 0)),
            # weights/biases: constant block index -> stay VMEM-resident.
            _resident(w1.shape),
            _resident(b1.shape),
            _resident(w2.shape),
            _resident(b2.shape),
            _resident(w3.shape),
            # scalar value-head bias: SMEM, no VMEM tile / DMA per step.
            pl.BlockSpec(memory_space=pltpu.MemorySpace.SMEM),
        ],
        # Lane-dense (1, tile) output row per step: unmasked stores and a
        # contiguous writeback DMA instead of masked (tile, 1) column stores.
        out_specs=pl.BlockSpec((1, 1, tile), lambda i: (i, 0, 0)),
        compiler_params=pltpu.CompilerParams(
            dimension_semantics=("parallel",),
            vmem_limit_bytes=int(vmem_limit_bytes),
        ),
        cost_estimate=pl.CostEstimate(
            flops=flops, transcendentals=0, bytes_accessed=bytes_accessed),
    )(x, w1, b1, w2, b2, w3, b3)

    return out.reshape(-1)[:B].reshape(B, 1)


def init_value_network_params(key, input_dims, fc1_dims, fc2_dims):
    """Deterministic init mimicking torch.nn.Linear (uniform +-1/sqrt(fan_in)).

    Weights are stored as (in_features, out_features) for direct x @ W use;
    the value-head weight is stored as a (1, fc2_dims) row.
    """
    k1, k2, k3, k4, k5, k6 = jax.random.split(key, 6)

    def uni(k, shape, fan_in):
        bound = 1.0 / jnp.sqrt(jnp.float32(fan_in))
        return jax.random.uniform(k, shape, jnp.float32, -bound, bound)

    return {
        "w1": uni(k1, (input_dims, fc1_dims), input_dims),
        "b1": uni(k2, (1, fc1_dims), input_dims),
        "w2": uni(k3, (fc1_dims, fc2_dims), fc1_dims),
        "b2": uni(k4, (1, fc2_dims), fc1_dims),
        "w3": uni(k5, (1, fc2_dims), fc2_dims),
        "b3": uni(k6, (1, 1), fc2_dims),
    }


def _reference_forward_f32(state, p):
    h1 = jnp.maximum(state @ p["w1"] + p["b1"], 0.0)
    h2 = jnp.maximum(h1 @ p["w2"] + p["b2"], 0.0)
    return h2 @ p["w3"].T + p["b3"]


def _reference_forward_matched(state, p, dtype):
    """Reference with the same casts / f32 accumulation as the kernel."""
    x = state.astype(dtype)
    w1, w2, w3 = (p["w1"].astype(dtype), p["w2"].astype(dtype),
                  p["w3"].astype(dtype))
    h1 = jnp.dot(x, w1, preferred_element_type=jnp.float32) + p["b1"]
    h1 = jnp.maximum(h1, 0.0).astype(dtype)
    h2 = jnp.dot(h1, w2, preferred_element_type=jnp.float32) + p["b2"]
    h2 = jnp.maximum(h2, 0.0)
    v = lax.dot_general(w3, h2.astype(dtype),
                        dimension_numbers=(((1,), (1,)), ((), ())),
                        preferred_element_type=jnp.float32)      # (1, B)
    return v.reshape(-1, 1) + p["b3"]


if __name__ == "__main__":
    # Small, module-consistent shapes. B=20 with tile_b=8 exercises the
    # multi-step batch pipeline (grid=(3,)) and the padded-tail path; the
    # default-tile call below exercises the >=2-step megacore split.
    B, input_dims, fc1_dims, fc2_dims = 20, 8, 32, 32

    key = jax.random.PRNGKey(0)
    k_state, k_params = jax.random.split(key)
    state = jax.random.normal(k_state, (B, input_dims), jnp.float32)
    params = init_value_network_params(k_params, input_dims, fc1_dims, fc2_dims)

    out = value_network_forward(state, params, tile_b=8)
    out = jax.block_until_ready(out)
    assert out.shape == (B, 1)

    # Check against a reference using identical bf16 casts / f32 accumulation.
    ref_matched = _reference_forward_matched(state, params, jnp.bfloat16)
    assert jnp.allclose(out, ref_matched, atol=2e-3, rtol=2e-3), (
        "mismatch vs matched-precision reference")

    # Sanity check against the pure-f32 PyTorch-equivalent math.
    ref_f32 = _reference_forward_f32(state, params)
    assert jnp.allclose(out, ref_f32, atol=5e-2, rtol=5e-2), (
        "mismatch vs f32 reference")

    # Default (generation-tuned) tiling path: grid has >= 2 steps for B=20.
    out2 = jax.block_until_ready(value_network_forward(state, params))
    assert out2.shape == (B, 1)
    assert jnp.allclose(out2, ref_matched, atol=2e-3, rtol=2e-3), (
        "mismatch on default-tile path")

    print("KERNEL_OK")
</pallas_src>

<mosaic_0001>
module attributes {stable_mosaic.version = 11 : i64} {
  func.func @_value_net_kernel(%arg0: i32, %arg1: memref<8x8xbf16, #tpu.memory_space<vmem>>, %arg2: memref<8x128xbf16, #tpu.memory_space<vmem>>, %arg3: memref<1x128xf32, #tpu.memory_space<vmem>>, %arg4: memref<128x128xbf16, #tpu.memory_space<vmem>>, %arg5: memref<1x128xf32, #tpu.memory_space<vmem>>, %arg6: memref<1x128xbf16, #tpu.memory_space<vmem>>, %arg7: memref<1x1xf32, #tpu.memory_space<smem>>, %arg8: memref<1x1x8xf32, #tpu.memory_space<vmem>>) attributes {dimension_semantics = [#tpu.dimension_semantics<parallel>], iteration_bounds = array<i64: 3>, scalar_prefetch = 0 : i64, scratch_operands = 0 : i64, tpu.core_type = #tpu.core_type<tc>, window_params = [{transform_indices = @transform_0, window_bounds = array<i64: 8, 8>}, {pipeline_mode = #tpu.pipeline_mode<synchronous>, transform_indices = @transform_1, window_bounds = array<i64: 8, 128>}, {pipeline_mode = #tpu.pipeline_mode<synchronous>, transform_indices = @transform_2, window_bounds = array<i64: 1, 128>}, {pipeline_mode = #tpu.pipeline_mode<synchronous>, transform_indices = @transform_3, window_bounds = array<i64: 128, 128>}, {pipeline_mode = #tpu.pipeline_mode<synchronous>, transform_indices = @transform_4, window_bounds = array<i64: 1, 128>}, {pipeline_mode = #tpu.pipeline_mode<synchronous>, transform_indices = @transform_5, window_bounds = array<i64: 1, 128>}, {transform_indices = @transform_6, window_bounds = array<i64: 1, 1>}, {transform_indices = @transform_7, window_bounds = array<i64: 1, 1, 8>}]} {
    %c0 = arith.constant 0 : index
    %c0_0 = arith.constant 0 : index
    %0 = vector.load %arg1[%c0, %c0_0] : memref<8x8xbf16, #tpu.memory_space<vmem>>, vector<8x8xbf16>
    %c0_1 = arith.constant 0 : index
    %c0_2 = arith.constant 0 : index
    %1 = vector.load %arg2[%c0_1, %c0_2] : memref<8x128xbf16, #tpu.memory_space<vmem>>, vector<8x128xbf16>
    %cst = arith.constant dense<0.000000e+00> : vector<8x128xf32>
    %2 = tpu.matmul %0, %1, %cst {dimension_numbers = #tpu.dot_dimension_numbers<[1], [0], [0], [1], [0, 0, 1, 1], [], []>} : vector<8x8xbf16>, vector<8x128xbf16>, vector<8x128xf32> -> vector<8x128xf32>
    %c0_3 = arith.constant 0 : index
    %c0_4 = arith.constant 0 : index
    %3 = vector.load %arg3[%c0_3, %c0_4] : memref<1x128xf32, #tpu.memory_space<vmem>>, vector<1x128xf32>
    %4 = vector.broadcast %3 : vector<1x128xf32> to vector<8x128xf32>
    %5 = arith.addf %2, %4 : vector<8x128xf32>
    %cst_5 = arith.constant 0.000000e+00 : f32
    %6 = vector.broadcast %cst_5 : f32 to vector<8x128xf32>
    %7 = arith.maximumf %5, %6 : vector<8x128xf32>
    %8 = arith.truncf %7 : vector<8x128xf32> to vector<8x128xbf16>
    %c0_6 = arith.constant 0 : index
    %c0_7 = arith.constant 0 : index
    %9 = vector.load %arg4[%c0_6, %c0_7] : memref<128x128xbf16, #tpu.memory_space<vmem>>, vector<128x128xbf16>
    %cst_8 = arith.constant dense<0.000000e+00> : vector<8x128xf32>
    %10 = tpu.matmul %8, %9, %cst_8 {dimension_numbers = #tpu.dot_dimension_numbers<[1], [0], [0], [1], [0, 0, 1, 1], [], []>} : vector<8x128xbf16>, vector<128x128xbf16>, vector<8x128xf32> -> vector<8x128xf32>
    %c0_9 = arith.constant 0 : index
    %c0_10 = arith.constant 0 : index
    %11 = vector.load %arg5[%c0_9, %c0_10] : memref<1x128xf32, #tpu.memory_space<vmem>>, vector<1x128xf32>
    %12 = vector.broadcast %11 : vector<1x128xf32> to vector<8x128xf32>
    %13 = arith.addf %10, %12 : vector<8x128xf32>
    %cst_11 = arith.constant 0.000000e+00 : f32
    %14 = vector.broadcast %cst_11 : f32 to vector<8x128xf32>
    %15 = arith.maximumf %13, %14 : vector<8x128xf32>
    %c0_12 = arith.constant 0 : index
    %c0_13 = arith.constant 0 : index
    %16 = vector.load %arg6[%c0_12, %c0_13] : memref<1x128xbf16, #tpu.memory_space<vmem>>, vector<1x128xbf16>
    %17 = arith.truncf %15 : vector<8x128xf32> to vector<8x128xbf16>
    %cst_14 = arith.constant dense<0.000000e+00> : vector<1x8xf32>
    %18 = tpu.matmul %16, %17, %cst_14 {dimension_numbers = #tpu.dot_dimension_numbers<[1], [1], [0], [0], [0, 0, 1, 0], [], []>} : vector<1x128xbf16>, vector<8x128xbf16>, vector<1x8xf32> -> vector<1x8xf32>
    %c0_15 = arith.constant 0 : index
    %c0_16 = arith.constant 0 : index
    %19 = memref.load %arg7[%c0_15, %c0_16] : memref<1x1xf32, #tpu.memory_space<smem>>
    %20 = vector.broadcast %19 : f32 to vector<1x8xf32>
    %21 = arith.addf %18, %20 : vector<1x8xf32>
    %22 = vector.shape_cast %21 : vector<1x8xf32> to vector<1x1x8xf32>
    %c0_17 = arith.constant 0 : index
    %c0_18 = arith.constant 0 : index
    %c0_19 = arith.constant 0 : index
    %23 = vector.load %arg8[%c0_17, %c0_18, %c0_19] : memref<1x1x8xf32, #tpu.memory_space<vmem>>, vector<1x1x8xf32>
    tpu.vector_store %arg8[%c0_17, %c0_18, %c0_19], %22 {strides = array<i32>} : memref<1x1x8xf32, #tpu.memory_space<vmem>>, vector<1x1x8xf32>,
    return
  }
  func.func @transform_0(%arg0: i32) -> (i32, i32) {
    %c0_i32 = arith.constant 0 : i32
    %c0_i32_0 = arith.constant 0 : i32
    return %arg0, %c0_i32 : i32, i32
  }
  func.func @transform_1(%arg0: i32) -> (i32, i32) {
    %c0_i32 = arith.constant 0 : i32
    %c0_i32_0 = arith.constant 0 : i32
    %c0_i32_1 = arith.constant 0 : i32
    return %c0_i32, %c0_i32_0 : i32, i32
  }
  func.func @transform_2(%arg0: i32) -> (i32, i32) {
    %c0_i32 = arith.constant 0 : i32
    %c0_i32_0 = arith.constant 0 : i32
    %c0_i32_1 = arith.constant 0 : i32
    return %c0_i32, %c0_i32_0 : i32, i32
  }
  func.func @transform_3(%arg0: i32) -> (i32, i32) {
    %c0_i32 = arith.constant 0 : i32
    %c0_i32_0 = arith.constant 0 : i32
    %c0_i32_1 = arith.constant 0 : i32
    return %c0_i32, %c0_i32_0 : i32, i32
  }
  func.func @transform_4(%arg0: i32) -> (i32, i32) {
    %c0_i32 = arith.constant 0 : i32
    %c0_i32_0 = arith.constant 0 : i32
    %c0_i32_1 = arith.constant 0 : i32
    return %c0_i32, %c0_i32_0 : i32, i32
  }
  func.func @transform_5(%arg0: i32) -> (i32, i32) {
    %c0_i32 = arith.constant 0 : i32
    %c0_i32_0 = arith.constant 0 : i32
    %c0_i32_1 = arith.constant 0 : i32
    return %c0_i32, %c0_i32_0 : i32, i32
  }
  func.func @transform_6(%arg0: i32) -> (i32, i32) {
    %c0_i32 = arith.constant 0 : i32
    %c0_i32_0 = arith.constant 0 : i32
    %c0_i32_1 = arith.constant 0 : i32
    return %c0_i32, %c0_i32_0 : i32, i32
  }
  func.func @transform_7(%arg0: i32) -> (i32, i32, i32) {
    %c0_i32 = arith.constant 0 : i32
    %c0_i32_0 = arith.constant 0 : i32
    %c0_i32_1 = arith.constant 0 : i32
    return %arg0, %c0_i32, %c0_i32_0 : i32, i32, i32
  }
}

</mosaic_0001>

<bundles_post_ra>
// kernel: tpu_custom_call.1
= control target key start
LH: loop header
LB: loop body
LE: loop exit
PB: predicated region body
PF: predicated region fallthrough
CT: control target
= control target key end

     0   :  { %s988_s0 = inlined_call_operand.vmem [shape: bf16[24,8], index: 0, kind: input, shape index: {}]   ;;  %s989_s1 = inlined_call_operand.vmem [shape: bf16[8,128], index: 1, kind: input, shape index: {}]   ;;  %s990_s2 = inlined_call_operand.vmem [shape: f32[1,128], index: 2, kind: input, shape index: {}]   ;;  %s991_s3 = inlined_call_operand.hbm [shape: bf16[128,128], index: 3, kind: input, shape index: {}]   ;;  %s992_s4 = inlined_call_operand.vmem [shape: f32[1,128], index: 4, kind: input, shape index: {}]   ;;  %s993_s5 = inlined_call_operand.vmem [shape: bf16[1,128], index: 5, kind: input, shape index: {}]   ;;  %s994_s6 = inlined_call_operand.<no memory space> [shape: f32[1,1], index: 6, kind: input, shape index: {}]   ;;  %s995_s7 = inlined_call_operand.hbm [shape: f32[3,1,8], index: 7, kind: output, shape index: {}]  }
   0x1   :  { %12 = sst [smem:[#allocation2]] %s994_s6 }
   0x2   :  { %13 = vsyncpa [#allocation4], 0 }
   0x3   :  { %14 = vsyncpa [#allocation5], 0 }
   0x4   :  { %16 = vsyncpa [#allocation5 + $0x1], 0  ;;  %s856_s26 = smov 0   ;;  %s858_s27 = smov 0  }
   0x5   :  { %s860_s28 = smov 0   ;;  %s862_s29 = smov 0  }
   0x6 LB: > { %s877_s6 = sadd.s32 4294967295, %s805_s29   ;;  %s587_s30 = sadd.s32 4294967294, %s805_s29   ;;  %s805_s29 = sphi %s862_s29, %s1003_s29   ;;  %s801_s28 = sphi %s860_s28, %s1002_s28   ;;  %s797_s27 = sphi %s858_s27, %s1001_s27   ;;  %s793_s26 = sphi %s856_s26, %s1000_s26  }
   0x7   : > { %s881_s8 = sadd.s32 1, %s805_s29   ;;  %s181_s9 = sadd.s32 1, %s801_s28 }
   0x8   : > { %s178_s10 = ssub.s32 %s805_s29, %s881_s8  ;;  %p191_p0 = scmp.ne.s32.totalorder %s801_s28, %s797_s27 }
   0x9   : > { %p179_p1 = scmp.eq.s32.totalorder %s178_s10, 0  ;;  %p192_p2 = scmp.eq.s32.totalorder %s877_s6, 2 }
   0xa   : > { %p197_p3 = scmp.ne.s32.totalorder %s797_s27, %s793_s26  ;;  %p198_p4 = scmp.eq.s32.totalorder %s587_s30, 2 }
   0xb   : > { %s892_s11 = scalar_select %p179_p1, %s801_s28, %s181_s9  }
   0xc   : > { %p894_p5 = por %p192_p2, %p191_p0  ;;  %p898_p6 = por %p198_p4, %p197_p3 }
   0xd   : > { %p588_p7 = scmp.ge.s32.totalorder %s805_s29, 1  ;;  %p205_p8 = scmp.lt.s32.totalorder %s805_s29, 4 }
   0xe   : > { %s997_s13 = scalar_select %p898_p6, 1, 0 }
   0xf   : > { %p667_p9 = scmp.eq.s32.totalorder %s877_s6, 0  ;;  %p905_p10 = pnand %p588_p7, %p205_p8 }
  0x10   : > { %s807_s15 = smov [#allocation3]  }
  0x11   : > { %s223_s16 = sshll.u32 %s807_s15, 4  ;;  %p659_p11 = pneg %p905_p10  ;;  %s224_s16 = int_to_ptr.vmem [resolvable:$true] %s223_s16 }
  0x12   : > { %s726_s17 = scalar_lea.vmem %s224_s16, 1024  ;;  %p734_p3 = scmp.lt.s32.totalorder %s224_s16, %s224_s16 }
  0x13   : > { %p660_p12 = pnand %p667_p9, %p659_p11  ;;  %p727_p0 = scmp.ne.s32.totalorder %s224_s16, %s726_s17 }
  0x14   : > { %p735_p4 = scmp.lt.s32.totalorder %s726_s17, %s726_s17 }
  0x15   : > { %p717_p13 = pneg %p660_p12 }
  0x16   : > { %p736_p6 = por %p735_p4, %p734_p3 }
  0x17   : > { %p729_p1 = pnand %p727_p0, %p717_p13 }
  0x19   : > { %p730_p2 = pneg %p729_p1 }
  0x1b   : > { %p737_p7 = pnand %p736_p6, %p730_p2 }
  0x1d   : > { %740 = shalt.err (!%p737_p7)
}
  0x1e   : > { %s808_s18 = smov 64   ;;  %s809_s19 = smov 4  }
  0x1f   : > { %662 = dma.hbm_to_vmem [thread:$0]  (!%p660_p12), %s991_s3, 1024, %s224_s16, [#allocation4], %s808_s18, %s808_s18, %s809_s19  }
  0x20   : > { %255 = sbr.rel (%p905_p10) target bundleno = 659 (0x293), region = 48 }
  0x25   : > { %784 = dma.done.wait (%p667_p9), [#allocation4], 1024  }
  0x26   : > { %786 = vsyncadd (%p667_p9), [#allocation4], 4294966272  ;;  %p285_p8 = scmp.lt.s32.totalorder %s877_s6, 2  ;;  %v810_v0 = vmov 0.0   ;;  %vm811_vm0 = vmmov 0   ;;  %vm303_vm1 = vcmask 1043456  }
  0x27   : > { %621 = vmatprep.subr.bf16.mxu0 %v810_v0  ;;  %623 = vmatprep.mubr.msk.bf16.mxu0 %vm811_vm0, %v810_v0  ;;  %v291_v1 = vld [vmem:[%s989_s1] sm:$0xf]  ;;  %vm299_vm2 = vcmask 64512   ;;  %v707_v3 = vld [vmem:[#allocation3 + $0x38] sm:$0xff]   ;;  %v708_v5 = vld [vmem:[#allocation3 + $0x30] sm:$0xff]   ;;  %s463_s20 = sld [smem:[#allocation2]] }
  0x28   : > { %s286_s22 = scalar_select %p285_p8, %s877_s6, 2  ;;  %627 = vmatprep.subr.bf16.mxu1 %v810_v0  ;;  %643 = vmatprep.mubr.msk.bf16.mxu1 %vm811_vm0, %v810_v0  ;;  %v305_v2 = vsel %vm303_vm1, %v291_v1, 0  ;;  %v709_v6 = vld [vmem:[#allocation3 + $0x28] sm:$0xff]   ;;  %v710_v7 = vld [vmem:[#allocation3 + $0x20] sm:$0xff]   ;;  %v711_v8 = vld [vmem:[#allocation3 + $0x18] sm:$0xff]   ;;  %vm505_vm3 = vcmask 57344  }
  0x29   : > { %622 = vmatpush3.bf16.msra.mxu0 %v305_v2  ;;  %628 = vmatpush3.bf16.msra.mxu1 %v707_v3  ;;  %v712_v9 = vld [vmem:[#allocation3 + $0x10] sm:$0xff]   ;;  %v713_v10 = vld [vmem:[#allocation3 + $0x8] sm:$0xff]   ;;  %v714_v11 = vld [vmem:[#allocation3] sm:$0xff]   ;;  %s283_s21 = sand.u32 1, %s797_s27   ;;  %s812_s14 = smov [#allocation6]  }
  0x2a   : > { %s593_s23 = sshll.u32 %s286_s22, 2  ;;  %647 = vmatprep.subr.bf16.mxu0 %v810_v0  ;;  %629 = vmatprep.subr.bf16.mxu1 %v810_v0  ;;  %v594_v12 = vld [vmem:[%s990_s2] ss:$0 sm:$0xff]  ;;  %s605_s22 = sshll.u32 %s877_s6, 4 }
  0x2b   : > { %s288_s30 = scalar_lea.vmem %s988_s0, %s593_s23  ;;  %v596_v20 = vld [vmem:[%s992_s4] ss:$0 sm:$0xff]  ;;  %s284_s23 = scalar_lea.vmem [#allocation6], %s283_s21 }
  0x2c   : > { %v290_v4 = vld [vmem:[%s288_s30] sm:$0xf]  ;;  %s520_s24 = sshll.u32 %s284_s23, 4  ;;  %s947_s9 = scalar_lea.hbm %s995_s7, %s605_s22  ;;  %s949_s24 = int_to_ptr.vmem [resolvable:$true] %s520_s24 }
  0x2d   : > { %624 = vmatmul.mubr.msk.bf16.vlgmr.msra.gmra.mxu0 %vm299_vm2, %v290_v4  ;;  %630 = vmatpush3.bf16.msra.mxu1 %v708_v5  ;;  %v461_v28 = vld [vmem:[%s993_s5] sm:$0x1]  ;;  %v464_v29 = vstv %s463_s20  ;;  %s508_s10 = scalar_lea.sflag [#allocation5], %s283_s21  ;;  %s741_s6 = scalar_lea.vmem %s949_s24, 16 }
  0x2e   : > { %649 = vmatprep.mubr.msk.bf16.mxu0 %vm811_vm0, %v810_v0  ;;  %631 = vmatprep.subr.bf16.mxu1 %v810_v0  ;;  %p742_p6 = scmp.ne.s32.totalorder %s949_s24, %s741_s6  ;;  %s745_s15 = sshll.u32 %s812_s14, 4  ;;  %s746_s15 = int_to_ptr.vmem [resolvable:$false] %s745_s15 }
  0x2f   : > { %s747_s16 = scalar_lea.vmem %s746_s15, 32  ;;  %p748_p11 = scmp.lt.s32.totalorder %s949_s24, %s746_s15 }
  0x30   : > { %p743_p9 = pnand %p742_p6, %p894_p5  ;;  %p749_p12 = scmp.lt.s32.totalorder %s747_s16, %s741_s6 }
  0x31   : > { %632 = vmatpush3.bf16.msra.mxu1 %v709_v6 }
  0x32   : > { %633 = vmatprep.subr.bf16.mxu1 %v810_v0  ;;  %p744_p10 = pneg %p743_p9  ;;  %p750_p13 = por %p749_p12, %p748_p11 }
  0x34   : > { %p751_p0 = pnand %p750_p13, %p744_p10 }
  0x35   : > { %634 = vmatpush3.bf16.msra.mxu1 %v710_v7 }
  0x36   : > { %635 = vmatprep.subr.bf16.mxu1 %v810_v0 }
  0x39   : > { %636 = vmatpush3.bf16.msra.mxu1 %v711_v8 }
  0x3a   : > { %637 = vmatprep.subr.bf16.mxu1 %v810_v0 }
  0x3d   : > { %638 = vmatpush3.bf16.msra.mxu1 %v712_v9 }
  0x3e   : > { %639 = vmatprep.subr.bf16.mxu1 %v810_v0 }
  0x41   : > { %640 = vmatpush3.bf16.msra.mxu1 %v713_v10 }
  0x42   : > { %641 = vmatprep.subr.bf16.mxu1 %v810_v0 }
  0x45   : > { %642 = vmatpush3.bf16.msra.mxu1 %v714_v11 }
  0xed   : > { %v341_v13 = vpop.f32.mrf.mxu0 }
  0xee   : > { %v342_v14 = vadd.f32 %v594_v12, %v341_v13 }
  0xef   : > { %v625_v15 = vpop.f32.mrf.mxu0 }
  0xf0   : > { %v347_v16 = vmax.f32 %v342_v14, 0.0 }
  0xf1   : > { %v344_v17 = vpop.f32.mrf.mxu0 }
  0xf2   : > { %v348_v18 = vpack.c.bf16 %v347_v16, %v347_v16 }
  0xf3   : > { %v626_v19 = vpop.f32.mrf.mxu0 }
  0xf4   : > { %644 = vmatmul.mubr.bf16.vlgmr.msra.gmra.mxu1 %v348_v18 }
 0x1b4   : > { %v454_v21 = vpop.f32.mrf.mxu1 }
 0x1b5   : > { %v455_v22 = vadd.f32 %v596_v20, %v454_v21 }
 0x1b6   : > { %v645_v23 = vpop.f32.mrf.mxu1 }
 0x1b7   : > { %v460_v24 = vmax.f32 %v455_v22, 0.0 }
 0x1b8   : > { %v457_v25 = vpop.f32.mrf.mxu1 }
 0x1b9   : > { %v462_v26 = vpack.c.bf16 %v460_v24, %v460_v24 }
 0x1ba   : > { %v646_v27 = vpop.f32.mrf.mxu1 }
 0x1bb   : > { %648 = vmatpush3.bf16.xpose.msra.mxu0 %v462_v26 }
 0x1c2   : > { %650 = vmatmul.mubr.bf16.vlgmr.msra.gmra.mxu0 %v461_v28 }
 0x282   : > { %v499_v30 = vpop.f32.mrf.mxu0 }
 0x283   : > { %v500_v31 = vadd.f32 %v499_v30, %v464_v29 }
 0x284   : > { %v651_v32 = vpop.f32.mrf.mxu0 }
 0x285   : > { %506 = vst.msk [vmem:[%s284_s23] sm:$0x1] %vm505_vm3, %v500_v31 }
 0x286   : > { %v502_v33 = vpop.f32.mrf.mxu0 }
 0x287   : > { %754 = shalt.err (!%p751_p0)
}
 0x288   : > { %s755_s17 = scalar_lea.hbm %s947_s9, 16  ;;  %s759_s20 = scalar_lea.hbm %s995_s7, 48 }
 0x289   : > { %p756_p1 = scmp.ne.s32.totalorder %s947_s9, %s755_s17  ;;  %p760_p4 = scmp.lt.s32.totalorder %s947_s9, %s995_s7 }
 0x28a   : > { %p761_p7 = scmp.lt.s32.totalorder %s759_s20, %s755_s17 }
 0x28b   : > { %p757_p2 = pnand %p756_p1, %p894_p5 }
 0x28c   : > { %p762_p8 = por %p761_p7, %p760_p4 }
 0x28d   : > { %p758_p3 = pneg %p757_p2 }
 0x28f   : > { %p763_p6 = pnand %p762_p8, %p758_p3 }
 0x291   : > { %766 = shalt.err (!%p763_p6)
}
 0x292   : > { %657 = dma.vmem_to_hbm [thread:$0]  (%p894_p5), %s949_s24, 16, %s947_s9, %s508_s10   ;;  %v652_v34 = vpop.f32.mrf.mxu0 }
 0x293 PF: > { %p669_p9 = scmp.ge.s32.totalorder %s805_s29, 2  ;;  %s532_s23 = sand.u32 1, %s793_s26  }
 0x294   : > { %p999_p10 = scmp.ne.s32.totalorder %s997_s13, 0  ;;  %s533_s25 = scalar_lea.sflag [#allocation5], %s532_s23 }
 0x296   : > { %p664_p11 = pnand %p669_p9, %p999_p10 }
 0x298   : > { %p665_p12 = pneg %p664_p11 }
 0x29a   : > { %788 = dma.done.wait (%p665_p12), %s533_s25, 16  }
 0x29b   : > { %790 = vsyncadd (%p665_p12), %s533_s25, 4294967280  ;;  %p19_p13 = scmp.ge.s32.totalorder %s881_s8, 5   ;;  %s1000_s26 = smov %s797_s27 }
 0x29c   : > { %s1001_s27 = smov %s801_s28  ;;  %s1002_s28 = smov %s892_s11 }
 0x29d   : > { %s1003_s29 = smov %s881_s8  ;;  %21 = sbr.rel (!%p19_p13) target bundleno = 6 (0x6), region = 88 }
 0x2a2   :  { %537 = vsyncpa [#allocation4], 1 }
 0x2a3   :  { %539 = vsyncpa [#allocation4 + $0x1], 1 }
 0x2a4   :  { %540 = vsyncpa [#allocation5], 1 }
 0x2a5   :  { %542 = vsyncpa [#allocation5 + $0x1], 1 }

</bundles_post_ra>
